<compile_context>
chip_gen: v7x
topology: tpu7x:2x2x1
jax: 0.10.0
libtpu: 0.0.40
codegen_flags: <defaults>
</compile_context>

<pallas_src>
import jax
import jax.numpy as jnp
from jax.experimental import pallas as pl
from jax.experimental.pallas import tpu as pltpu  # noqa: F401  (imported per convention)


def _round_up(n, m):
    return (n + m - 1) // m * m


def class_model_forward(x, w1, b1, gamma, beta, w2, b2, *, compute_dtype=jnp.float32):
    """Fused MLP forward: Linear -> BatchNorm1d (batch stats) -> ReLU -> Linear.

    b1 is accepted (to mirror the PyTorch module's parameters) but never sent to the
    kernel: BatchNorm in training mode subtracts the per-batch mean, which cancels the
    Linear-1 bias exactly.
    """
    del b1  # cancels against the BatchNorm mean subtraction

    B, IN = x.shape
    H = w1.shape[1]
    OUT = w2.shape[1]
    Hp = _round_up(H, 128)          # lane-dense hidden width
    Op = _round_up(OUT, 128)        # lane-dense output width
    LP = max(Hp, Op)

    f32 = jnp.float32
    # Zero-pad weight columns/rows (inert through BN/ReLU/Linear-2).
    w1p = jnp.zeros((IN, Hp), f32).at[:, :H].set(w1.astype(f32))
    w2p = jnp.zeros((Hp, Op), f32).at[:H, :OUT].set(w2.astype(f32))
    # Pack gamma / beta / b2 into one lane-dense operand (padding is zero, incl. gamma).
    vec = jnp.zeros((3, LP), f32)
    vec = vec.at[0, :H].set(gamma.reshape(-1).astype(f32))
    vec = vec.at[1, :H].set(beta.reshape(-1).astype(f32))
    vec = vec.at[2, :OUT].set(b2.reshape(-1).astype(f32))

    # MXU operand dtype (bf16 halves operand traffic on v6e/v7x; accumulation stays f32).
    xc = x.astype(compute_dtype)
    w1c = w1p.astype(compute_dtype)
    w2c = w2p.astype(compute_dtype)

    def kernel(x_ref, w1_ref, vec_ref, w2_ref, o_ref):
        # Linear 1 (MXU), f32 accumulation. Bias omitted (cancels in BatchNorm).
        h = jnp.dot(x_ref[...], w1_ref[...], preferred_element_type=jnp.float32)

        # BatchNorm1d: training-mode batch statistics, biased variance, eps=1e-5 (f32).
        mean = jnp.mean(h, axis=0, keepdims=True)
        c = h - mean
        var = jnp.mean(c * c, axis=0, keepdims=True)
        h = c * jax.lax.rsqrt(var + 1e-5)
        h = h * vec_ref[0:1, :Hp] + vec_ref[1:2, :Hp]   # gamma, beta

        # ReLU
        h = jnp.maximum(h, 0.0)

        # Linear 2 (MXU) + bias.
        out = jnp.dot(h.astype(w2_ref.dtype), w2_ref[...],
                      preferred_element_type=jnp.float32) + vec_ref[2:3, :Op]
        o_ref[...] = out.astype(o_ref.dtype)

    full = lambda shape: pl.BlockSpec(shape, lambda: (0,) * len(shape))

    op_bytes = jnp.dtype(compute_dtype).itemsize
    cost = pl.CostEstimate(
        flops=2 * B * (IN * Hp + Hp * Op),
        transcendentals=Hp,  # rsqrt per hidden column
        bytes_accessed=(xc.size + w1c.size + w2c.size) * op_bytes
        + vec.size * 4
        + B * Op * 4,
    )

    out_padded = pl.pallas_call(
        kernel,
        out_shape=jax.ShapeDtypeStruct((B, Op), jnp.float32),
        grid=(),
        in_specs=[full(xc.shape), full(w1c.shape), full(vec.shape), full(w2c.shape)],
        out_specs=full((B, Op)),
        cost_estimate=cost,
    )(xc, w1c, vec, w2c)

    return out_padded[:, :OUT]


def init_params(key, in_, hidden, out_):
    """Deterministic synthetic parameters (PyTorch-Linear-style uniform init)."""
    k1, k2, k3, k4 = jax.random.split(key, 4)
    bound1 = 1.0 / jnp.sqrt(in_)
    bound2 = 1.0 / jnp.sqrt(hidden)
    w1 = jax.random.uniform(k1, (in_, hidden), jnp.float32, -bound1, bound1)
    b1 = jax.random.uniform(k2, (1, hidden), jnp.float32, -bound1, bound1)
    w2 = jax.random.uniform(k3, (hidden, out_), jnp.float32, -bound2, bound2)
    b2 = jax.random.uniform(k4, (1, out_), jnp.float32, -bound2, bound2)
    gamma = jnp.ones((1, hidden), jnp.float32)   # BatchNorm1d.weight init
    beta = jnp.zeros((1, hidden), jnp.float32)   # BatchNorm1d.bias init
    return w1, b1, gamma, beta, w2, b2


def reference_forward(x, w1, b1, gamma, beta, w2, b2):
    """Pure-JAX reference with the exact PyTorch module semantics (b1 included)."""
    h = x @ w1 + b1
    mean = jnp.mean(h, axis=0, keepdims=True)
    var = jnp.mean((h - mean) ** 2, axis=0, keepdims=True)
    h = (h - mean) / jnp.sqrt(var + 1e-5)
    h = h * gamma + beta
    h = jnp.maximum(h, 0.0)
    return h @ w2 + b2


if __name__ == "__main__":
    # Small shapes consistent with the module: batch=8, in_=32, hidden=100 (default
    # node_list=[100]), out_=16.
    B, IN, HIDDEN, OUT = 8, 32, 100, 16

    key = jax.random.PRNGKey(0)
    kx, kp = jax.random.split(key)
    x = jax.random.normal(kx, (B, IN), jnp.float32)
    params = init_params(kp, IN, HIDDEN, OUT)

    ref = reference_forward(x, *params)

    # f32 path: strict tolerance (only ulp-level deviation from dropping the cancelled b1).
    out = jax.block_until_ready(class_model_forward(x, *params))
    assert out.shape == (B, OUT)
    assert jnp.allclose(out, ref, atol=1e-4, rtol=1e-4), "f32 mismatch vs reference"

    # bf16-MXU path (v6e/v7x fast path): f32 accumulation + f32 BN stats, looser tolerance
    # purely from bf16 operand quantization.
    out_bf16 = jax.block_until_ready(
        class_model_forward(x, *params, compute_dtype=jnp.bfloat16))
    assert jnp.allclose(out_bf16, ref, atol=3e-2, rtol=3e-2), "bf16 mismatch vs reference"

    print("KERNEL_OK")
</pallas_src>

<mosaic_0001>
module attributes {stable_mosaic.version = 11 : i64} {
  func.func @kernel(%arg0: memref<8x32xf32, #tpu.memory_space<vmem>>, %arg1: memref<32x128xf32, #tpu.memory_space<vmem>>, %arg2: memref<3x128xf32, #tpu.memory_space<vmem>>, %arg3: memref<128x128xf32, #tpu.memory_space<vmem>>, %arg4: memref<8x128xf32, #tpu.memory_space<vmem>>) attributes {dimension_semantics = [], scalar_prefetch = 0 : i64, scratch_operands = 0 : i64, tpu.core_type = #tpu.core_type<tc>} {
    %c0 = arith.constant 0 : index
    %c0_0 = arith.constant 0 : index
    %0 = vector.load %arg0[%c0, %c0_0] : memref<8x32xf32, #tpu.memory_space<vmem>>, vector<8x32xf32>
    %c0_1 = arith.constant 0 : index
    %c0_2 = arith.constant 0 : index
    %1 = vector.load %arg1[%c0_1, %c0_2] : memref<32x128xf32, #tpu.memory_space<vmem>>, vector<32x128xf32>
    %cst = arith.constant dense<0.000000e+00> : vector<8x128xf32>
    %2 = tpu.matmul %0, %1, %cst {dimension_numbers = #tpu.dot_dimension_numbers<[1], [0], [0], [1], [0, 0, 1, 1], [], []>} : vector<8x32xf32>, vector<32x128xf32>, vector<8x128xf32> -> vector<8x128xf32>
    %cst_3 = arith.constant dense<0.000000e+00> : vector<128xf32>
    %3 = vector.multi_reduction <add>, %2, %cst_3 [0] : vector<8x128xf32> to vector<128xf32>
    %4 = vector.shape_cast %3 : vector<128xf32> to vector<1x128xf32>
    %cst_4 = arith.constant 8.000000e+00 : f32
    %5 = vector.broadcast %cst_4 : f32 to vector<1x128xf32>
    %6 = arith.divf %4, %5 : vector<1x128xf32>
    %7 = vector.broadcast %6 : vector<1x128xf32> to vector<8x128xf32>
    %8 = arith.subf %2, %7 : vector<8x128xf32>
    %9 = arith.mulf %8, %8 : vector<8x128xf32>
    %cst_5 = arith.constant dense<0.000000e+00> : vector<128xf32>
    %10 = vector.multi_reduction <add>, %9, %cst_5 [0] : vector<8x128xf32> to vector<128xf32>
    %11 = vector.shape_cast %10 : vector<128xf32> to vector<1x128xf32>
    %cst_6 = arith.constant 8.000000e+00 : f32
    %12 = vector.broadcast %cst_6 : f32 to vector<1x128xf32>
    %13 = arith.divf %11, %12 : vector<1x128xf32>
    %cst_7 = arith.constant 9.99999974E-6 : f32
    %14 = vector.broadcast %cst_7 : f32 to vector<1x128xf32>
    %15 = arith.addf %13, %14 : vector<1x128xf32>
    %16 = math.rsqrt %15 : vector<1x128xf32>
    %17 = vector.broadcast %16 : vector<1x128xf32> to vector<8x128xf32>
    %18 = arith.mulf %8, %17 : vector<8x128xf32>
    %c0_8 = arith.constant 0 : index
    %c0_9 = arith.constant 0 : index
    %19 = vector.load %arg2[%c0_8, %c0_9] : memref<3x128xf32, #tpu.memory_space<vmem>>, vector<1x128xf32>
    %20 = vector.broadcast %19 : vector<1x128xf32> to vector<8x128xf32>
    %21 = arith.mulf %18, %20 : vector<8x128xf32>
    %c1 = arith.constant 1 : index
    %c0_10 = arith.constant 0 : index
    %22 = vector.load %arg2[%c1, %c0_10] : memref<3x128xf32, #tpu.memory_space<vmem>>, vector<1x128xf32>
    %23 = vector.broadcast %22 : vector<1x128xf32> to vector<8x128xf32>
    %24 = arith.addf %21, %23 : vector<8x128xf32>
    %cst_11 = arith.constant 0.000000e+00 : f32
    %25 = vector.broadcast %cst_11 : f32 to vector<8x128xf32>
    %26 = arith.maximumf %24, %25 : vector<8x128xf32>
    %c0_12 = arith.constant 0 : index
    %c0_13 = arith.constant 0 : index
    %27 = vector.load %arg3[%c0_12, %c0_13] : memref<128x128xf32, #tpu.memory_space<vmem>>, vector<128x128xf32>
    %cst_14 = arith.constant dense<0.000000e+00> : vector<8x128xf32>
    %28 = tpu.matmul %26, %27, %cst_14 {dimension_numbers = #tpu.dot_dimension_numbers<[1], [0], [0], [1], [0, 0, 1, 1], [], []>} : vector<8x128xf32>, vector<128x128xf32>, vector<8x128xf32> -> vector<8x128xf32>
    %c2 = arith.constant 2 : index
    %c0_15 = arith.constant 0 : index
    %29 = vector.load %arg2[%c2, %c0_15] : memref<3x128xf32, #tpu.memory_space<vmem>>, vector<1x128xf32>
    %30 = vector.broadcast %29 : vector<1x128xf32> to vector<8x128xf32>
    %31 = arith.addf %28, %30 : vector<8x128xf32>
    %c0_16 = arith.constant 0 : index
    %c0_17 = arith.constant 0 : index
    %32 = vector.load %arg4[%c0_16, %c0_17] : memref<8x128xf32, #tpu.memory_space<vmem>>, vector<8x128xf32>
    tpu.vector_store %arg4[%c0_16, %c0_17], %31 {strides = array<i32>} : memref<8x128xf32, #tpu.memory_space<vmem>>, vector<8x128xf32>,
    return
  }
}

</mosaic_0001>

<bundles_post_ra>
// kernel: tpu_custom_call.1
= control target key start
LH: loop header
LB: loop body
LE: loop exit
PB: predicated region body
PF: predicated region fallthrough
CT: control target
= control target key end

     0   :  { %9 = vsyncpa [#allocation3], 0  ;;  %s581_s0 = inlined_call_operand.hbm [shape: f32[8,32], index: 0, kind: input, shape index: {}]   ;;  %s582_s1 = inlined_call_operand.hbm [shape: f32[32,128], index: 1, kind: input, shape index: {}]   ;;  %s583_s2 = inlined_call_operand.vmem [shape: f32[3,128], index: 2, kind: input, shape index: {}]   ;;  %s584_s3 = inlined_call_operand.hbm [shape: f32[128,128], index: 3, kind: input, shape index: {}]   ;;  %s585_s4 = inlined_call_operand.hbm [shape: f32[8,128], index: 4, kind: output, shape index: {}]  }
   0x1   :  { %10 = vsyncpa [#allocation6], 0 }
   0x2   :  { %11 = vsyncpa [#allocation4], 0  ;;  %s484_s15 = smov [#allocation5]   ;;  %s390_s19 = scalar_lea.hbm %s582_s1, 512 }
   0x3   :  { %s27_s16 = sshll.u32 %s484_s15, 4  ;;  %p391_p0 = scmp.ne.s32.totalorder %s582_s1, %s390_s19  ;;  %s28_s16 = int_to_ptr.vmem [resolvable:$true] %s27_s16 }
   0x4   :  { %p394_p1 = scmp.lt.u32.totalorder %s390_s19, %s582_s1 }
   0x6   :  { %p396_p2 = pnand %p394_p1, %p391_p0 }
   0x8   :  { %399 = shalt.err (!%p396_p2)
}
   0x9   :  { %s400_s24 = scalar_lea.vmem %s28_s16, 512  ;;  %p405_p4 = scmp.lt.s32.totalorder %s28_s16, %s28_s16 }
   0xa   :  { %p401_p3 = scmp.ne.s32.totalorder %s28_s16, %s400_s24  ;;  %p406_p5 = scmp.lt.s32.totalorder %s400_s24, %s400_s24 }
   0xc   :  { %p407_p6 = por %p406_p5, %p405_p4 }
   0xe   :  { %p408_p7 = pnand %p407_p6, %p401_p3 }
  0x10   :  { %411 = shalt.err (!%p408_p7)
}
  0x11   :  { %s485_s25 = smov 128   ;;  %s486_s26 = smov 8  }
  0x12   :  { %33 = dma.hbm_to_vmem [thread:$0]  %s582_s1, 512, %s28_s16, [#allocation6], %s485_s25, %s485_s25, %s486_s26  }
  0x13   :  { %s487_s29 = smov [#allocation2]   ;;  %s488_s5 = smov [#allocation7]  }
  0x14   :  { %s18_s30 = sshll.u32 %s487_s29, 4  ;;  %s41_s6 = sshll.u32 %s488_s5, 4  ;;  %s19_s30 = int_to_ptr.vmem [resolvable:$true] %s18_s30  ;;  %s42_s6 = int_to_ptr.vmem [resolvable:$true] %s41_s6 }
  0x15   :  { %s412_s9 = scalar_lea.hbm %s581_s0, 128 }
  0x16   :  { %p413_p8 = scmp.ne.s32.totalorder %s581_s0, %s412_s9  ;;  %p416_p9 = scmp.lt.u32.totalorder %s412_s9, %s581_s0 }
  0x18   :  { %p418_p10 = pnand %p416_p9, %p413_p8 }
  0x1a   :  { %421 = shalt.err (!%p418_p10)
}
  0x1b   :  { %s422_s1 = scalar_lea.vmem %s19_s30, 128  ;;  %p427_p12 = scmp.lt.s32.totalorder %s19_s30, %s19_s30 }
  0x1c   :  { %p423_p11 = scmp.ne.s32.totalorder %s19_s30, %s422_s1  ;;  %p428_p13 = scmp.lt.s32.totalorder %s422_s1, %s422_s1 }
  0x1e   :  { %p429_p0 = por %p428_p13, %p427_p12 }
  0x20   :  { %p430_p1 = pnand %p429_p0, %p423_p11 }
  0x22   :  { %433 = shalt.err (!%p430_p1)
}
  0x23   :  { %21 = dma.hbm_to_vmem [thread:$0]  %s581_s0, 128, %s19_s30, [#allocation3]  }
  0x24   :  { %s434_s18 = scalar_lea.hbm %s584_s3, 2048 }
  0x25   :  { %p435_p2 = scmp.ne.s32.totalorder %s584_s3, %s434_s18  ;;  %p438_p3 = scmp.lt.u32.totalorder %s434_s18, %s584_s3 }
  0x27   :  { %p440_p4 = pnand %p438_p3, %p435_p2 }
  0x29   :  { %443 = shalt.err (!%p440_p4)
}
  0x2a   :  { %s444_s23 = scalar_lea.vmem %s42_s6, 2048  ;;  %p449_p6 = scmp.lt.s32.totalorder %s42_s6, %s42_s6 }
  0x2b   :  { %p445_p5 = scmp.ne.s32.totalorder %s42_s6, %s444_s23  ;;  %p450_p7 = scmp.lt.s32.totalorder %s444_s23, %s444_s23 }
  0x2d   :  { %p451_p8 = por %p450_p7, %p449_p6 }
  0x2f   :  { %p452_p9 = pnand %p451_p8, %p445_p5 }
  0x31   :  { %455 = shalt.err (!%p452_p9)
}
  0x32   :  { %47 = dma.hbm_to_vmem [thread:$0]  %s584_s3, 2048, %s42_s6, [#allocation6], %s485_s25, %s485_s25, %s486_s26  }
  0x33   :  { %478 = dma.done.wait [#allocation3], 128  }
  0x34   :  { %479 = vsyncadd [#allocation3], 4294967168 }
  0x35   :  { %480 = dma.done.wait [#allocation6], 2560  }
  0x36   :  { %481 = vsyncadd [#allocation6], 4294964736  ;;  %v489_v0 = vmov 0.0|0.0   ;;  %vm490_vm0 = vmmov 0   ;;  %v491_v1 = vmov 0.0   ;;  %v58_v2 = vld [vmem:[#allocation5] sm:$0xff] }
  0x37   :  { %349 = vmatprep.subr.bf16.mxu0 %v489_v0  ;;  %311 = vmatprep.mubr.msk.f32.mxu0 %vm490_vm0, %v491_v1  ;;  %v59_v3 = vld [vmem:[#allocation5 + $0x8] sm:$0xff]  ;;  %v60_v4 = vld [vmem:[#allocation5 + $0x10] sm:$0xff]  ;;  %v61_v6 = vld [vmem:[#allocation5 + $0x18] sm:$0xff]  ;;  %vm62_vm1 = vcmask 261120   ;;  %s492_s30 = smov [#allocation8]  }
  0x38   :  { %355 = vmatprep.subr.bf16.mxu1 %v489_v0  ;;  %346 = vmatprep.mubr.msk.f32.mxu1 %vm490_vm0, %v491_v1  ;;  %v350_v5 = vpack.c.bf16 %v59_v3, %v58_v2  ;;  %v353_v7 = vpack.c.bf16 %v61_v6, %v60_v4  ;;  %v57_v8 = vld [vmem:[#allocation2] sm:$0xff]  ;;  %v169_v9 = vld [vmem:[#allocation7] sm:$0xff]  ;;  %v170_v10 = vld [vmem:[#allocation7 + $0x8] sm:$0xff]  ;;  %s267_s5 = sshll.u32 %s492_s30, 4  ;;  %s268_s5 = int_to_ptr.vmem [resolvable:$true] %s267_s5 }
  0x39   :  { %v356_v11 = vpack.c.bf16 %v170_v10, %v169_v9  ;;  %v171_v12 = vld [vmem:[#allocation7 + $0x10] sm:$0xff]  ;;  %v172_v13 = vld [vmem:[#allocation7 + $0x18] sm:$0xff]  ;;  %v173_v15 = vld [vmem:[#allocation7 + $0x20] sm:$0xff]  ;;  %s456_s6 = scalar_lea.vmem %s268_s5, 128  ;;  %p461_p11 = scmp.lt.s32.totalorder %s268_s5, %s268_s5 }
  0x3a   :  { %351 = vmatpush3.bf16.msra.mxu0 %v350_v5  ;;  %v359_v14 = vpack.c.bf16 %v172_v13, %v171_v12  ;;  %v174_v16 = vld [vmem:[#allocation7 + $0x28] sm:$0xff]  ;;  %v175_v18 = vld [vmem:[#allocation7 + $0x30] sm:$0xff]  ;;  %v176_v19 = vld [vmem:[#allocation7 + $0x38] sm:$0xff]  ;;  %p457_p10 = scmp.ne.s32.totalorder %s268_s5, %s456_s6  ;;  %p462_p12 = scmp.lt.s32.totalorder %s456_s6, %s456_s6 }
  0x3b   :  { %352 = vmatprep.subr.bf16.mxu0 %v489_v0  ;;  %357 = vmatpush3.bf16.msra.mxu1 %v356_v11  ;;  %v362_v17 = vpack.c.bf16 %v174_v16, %v173_v15  ;;  %v365_v20 = vpack.c.bf16 %v176_v19, %v175_v18  ;;  %v177_v21 = vld [vmem:[#allocation7 + $0x40] sm:$0xff]  ;;  %v178_v22 = vld [vmem:[#allocation7 + $0x48] sm:$0xff]  ;;  %v179_v24 = vld [vmem:[#allocation7 + $0x50] sm:$0xff] }
  0x3c   :  { %358 = vmatprep.subr.bf16.mxu1 %v489_v0  ;;  %v368_v23 = vpack.c.bf16 %v178_v22, %v177_v21  ;;  %v180_v25 = vld [vmem:[#allocation7 + $0x58] sm:$0xff]  ;;  %v181_v27 = vld [vmem:[#allocation7 + $0x60] sm:$0xff]  ;;  %v182_v28 = vld [vmem:[#allocation7 + $0x68] sm:$0xff]  ;;  %p463_p13 = por %p462_p12, %p461_p11 }
  0x3d   :  { %v371_v26 = vpack.c.bf16 %v180_v25, %v179_v24  ;;  %v374_v29 = vpack.c.bf16 %v182_v28, %v181_v27  ;;  %v183_v30 = vld [vmem:[#allocation7 + $0x70] sm:$0xff]  ;;  %v184_v31 = vld [vmem:[#allocation7 + $0x78] sm:$0xff] }
  0x3e   :  { %354 = vmatpush3.bf16.msra.mxu0 %v353_v7  ;;  %v377_v32 = vpack.c.bf16 %v184_v31, %v183_v30  ;;  %v278_v53 = vld [vmem:[%s583_s2] ss:$0 sm:$0xff]  ;;  %v279_v55 = vld [vmem:[%s583_s2 + $0x1] ss:$0 sm:$0xff]  ;;  %v280_v59 = vld [vmem:[%s583_s2 + $0x2] ss:$0 sm:$0xff]  ;;  %p464_p0 = pnand %p463_p13, %p457_p10 }
  0x3f   :  { %360 = vmatpush3.bf16.msra.mxu1 %v359_v14 }
  0x40   :  { %361 = vmatprep.subr.bf16.mxu1 %v489_v0 }
  0x41   :  { %312 = vmatmul.mubr.msk.f32.vlgmr.msra.gmra.mrb[0].mxu0 %vm62_vm1, %v57_v8 }
  0x43   :  { %363 = vmatpush3.bf16.msra.mxu1 %v362_v17 }
  0x44   :  { %364 = vmatprep.subr.bf16.mxu1 %v489_v0 }
  0x47   :  { %366 = vmatpush3.bf16.msra.mxu1 %v365_v20 }
  0x48   :  { %367 = vmatprep.subr.bf16.mxu1 %v489_v0 }
  0x4b   :  { %369 = vmatpush3.bf16.msra.mxu1 %v368_v23 }
  0x4c   :  { %370 = vmatprep.subr.bf16.mxu1 %v489_v0 }
  0x4f   :  { %372 = vmatpush3.bf16.msra.mxu1 %v371_v26 }
  0x50   :  { %373 = vmatprep.subr.bf16.mxu1 %v489_v0 }
  0x53   :  { %375 = vmatpush3.bf16.msra.mxu1 %v374_v29 }
  0x54   :  { %376 = vmatprep.subr.bf16.mxu1 %v489_v0 }
  0x57   :  { %378 = vmatpush3.bf16.msra.mxu1 %v377_v32 }
 0x114   :  { %v132_v33 = vpop.f32.mrb[0].mxu0 }
 0x115   :  { %v136_v34 = vrot.slane %v132_v33, 4  ;;  %v313_v35 = vpop.f32.mrb[1].mxu0 }
 0x117   :  { %v137_v36 = vadd.f32 %v136_v34, %v132_v33 }
 0x119   :  { %v138_v37 = vrot.slane %v137_v36, 2 }
 0x11b   :  { %v139_v38 = vadd.f32 %v138_v37, %v137_v36 }
 0x11d   :  { %v140_v39 = vrot.slane %v139_v38, 1 }
 0x11f   :  { %v141_v40 = vadd.f32 %v140_v39, %v139_v38 }
 0x121   :  { %v143_v41 = vmul.f32 0.125, %v141_v40 }
 0x123   :  { %v144_v42 = vsub.f32 %v132_v33, %v143_v41 }
 0x125   :  { %v145_v43 = vmul.f32 %v144_v42, %v144_v42 }
 0x127   :  { %v146_v44 = vrot.slane %v145_v43, 4 }
 0x129   :  { %v147_v45 = vadd.f32 %v146_v44, %v145_v43 }
 0x12b   :  { %v148_v46 = vrot.slane %v147_v45, 2 }
 0x12d   :  { %v149_v47 = vadd.f32 %v148_v46, %v147_v45 }
 0x12f   :  { %v150_v48 = vrot.slane %v149_v47, 1 }
 0x131   :  { %v151_v49 = vadd.f32 %v150_v48, %v149_v47 }
 0x133   :  { %v152_v50 = vmul.f32 0.125, %v151_v49 }
 0x135   :  { %v153_v51 = vadd.f32 1e-05, %v152_v50 }
 0x137   :  { %388 = vrsqrt.f32 %v153_v51 }
 0x141   :  { %v389_v52 = vpop.eup %388 }
 0x142   :  { %v155_v54 = vmul.f32 %v389_v52, %v144_v42 }
 0x144   :  { %v161_v56 = vmul.f32 %v278_v53, %v155_v54 }
 0x146   :  { %v167_v57 = vadd.f32 %v279_v55, %v161_v56 }
 0x148   :  { %v168_v58 = vmax.f32 %v167_v57, 0.0 }
 0x14a   :  { %347 = vmatmul.mubr.f32.vlgmr.msra.gmra.mrb[0].mxu1 %v168_v58 }
 0x21d   :  { %v256_v60 = vpop.f32.mrb[0].mxu1 }
 0x21e   :  { %v257_v61 = vadd.f32 %v280_v59, %v256_v60  ;;  %v348_v62 = vpop.f32.mrb[1].mxu1 }
 0x220   :  { %260 = vst [vmem:[#allocation8] sm:$0xff] %v257_v61 }
 0x221   :  { %467 = shalt.err (!%p464_p0)
}
 0x222   :  { %s468_s9 = scalar_lea.hbm %s585_s4, 128 }
 0x223   :  { %p469_p1 = scmp.ne.s32.totalorder %s585_s4, %s468_s9  ;;  %p472_p2 = scmp.lt.u32.totalorder %s468_s9, %s585_s4 }
 0x225   :  { %p474_p3 = pnand %p472_p2, %p469_p1 }
 0x227   :  { %477 = shalt.err (!%p474_p3)
}
 0x228   :  { %270 = dma.vmem_to_hbm [thread:$0]  %s268_s5, 128, %s585_s4, [#allocation4]  }
 0x229   :  { %482 = dma.done.wait [#allocation4], 128  }
 0x22a   :  { %483 = vsyncadd [#allocation4], 4294967168 }
 0x22b   :  { %274 = vsyncpa [#allocation3], 1 }
 0x22c   :  { %275 = vsyncpa [#allocation6], 1 }
 0x22d   :  { %276 = vsyncpa [#allocation4], 1 }

</bundles_post_ra>
